<compile_context>
chip_gen: v5e
topology: v5e:2x2
jax: 0.10.0
libtpu: 0.0.40
codegen_flags: <defaults>
</compile_context>

<pallas_src>
import math
from functools import partial

import jax
import jax.numpy as jnp
from jax.experimental import pallas as pl
from jax.experimental.pallas import tpu as pltpu

N_HIDDEN = 30   # fixed in the PyTorch module
LANE = 128      # TPU lane width


def _round_up(x, m):
    return (x + m - 1) // m * m


def _cdiv(a, b):
    return (a + b - 1) // b


def _choose_tiling(B, block_rows):
    """Pick (tm, steps, bpad) minimizing batch padding while keeping >=2
    (even) grid steps for v7x megacore whenever the batch is big enough."""
    min_steps = 2 if B >= 16 else 1
    steps = max(_cdiv(B, block_rows), min_steps)
    if steps > 1 and steps % 2 == 1:
        steps += 1                      # balance the two v7x TensorCores
    tm = _round_up(_cdiv(B, steps), 8)  # sublane-aligned rows per step
    bpad = steps * tm
    return tm, steps, bpad


def qswitch_kernel(x_ref, w1_ref, b1_ref, w2_ref, b2_ref, o_ref):
    # One batch tile per grid step; weights/biases are the same resident block
    # every step (index_maps return (0, 0)).  Matmuls run at 128-lane padded
    # width; only the real n_out lanes are stored.
    n_out = o_ref.shape[1]
    x = x_ref[...]                                                    # [TM, n_in]
    h = jnp.dot(x, w1_ref[...],
                preferred_element_type=jnp.float32) + b1_ref[...]     # [TM, HPAD] f32
    h = jnp.maximum(h, 0.0)                                           # activation1 (ReLU), f32
    y = jnp.dot(h.astype(w2_ref.dtype), w2_ref[...],
                preferred_element_type=jnp.float32) + b2_ref[...]     # [TM, OPAD] f32
    y = jnp.maximum(y, 0.0)                                           # activation2 (ReLU), f32
    o_ref[...] = y[:, :n_out].astype(o_ref.dtype)                     # narrow store (real cols)


@partial(jax.jit, static_argnames=("block_rows", "use_bf16"))
def qswitch_forward(x, w1, b1, w2, b2, *, block_rows=2048, use_bf16=False):
    """x: [B, n_in] f32; w1: [n_in, n_hidden]; b1: [1, n_hidden];
       w2: [n_hidden, n_out]; b2: [1, n_out]  ->  [B, n_out] f32."""
    B, n_in = x.shape
    n_hidden = w1.shape[1]
    n_out = w2.shape[1]

    # MXU operands zero-padded to full 128-lane width; padded hidden lanes stay
    # exactly 0 through bias+ReLU (zero weight columns / bias entries) and
    # contribute nothing to the second matmul.  Biases always stay f32.
    hpad = _round_up(n_hidden, LANE)
    opad = _round_up(n_out, LANE)
    mxu_dtype = jnp.bfloat16 if use_bf16 else jnp.float32

    w1p = jnp.zeros((n_in, hpad), jnp.float32).at[:, :n_hidden].set(w1).astype(mxu_dtype)
    b1p = jnp.zeros((1, hpad), jnp.float32).at[:, :n_hidden].set(b1)
    w2p = jnp.zeros((hpad, opad), jnp.float32).at[:n_hidden, :n_out].set(w2).astype(mxu_dtype)
    b2p = jnp.zeros((1, opad), jnp.float32).at[:, :n_out].set(b2)

    tm, steps, bpad = _choose_tiling(B, block_rows)
    xp = x.astype(mxu_dtype)
    if bpad != B:
        xp = jnp.zeros((bpad, n_in), mxu_dtype).at[:B, :].set(xp)

    in_bytes = jnp.dtype(mxu_dtype).itemsize
    flops = 2 * bpad * (n_in * hpad + hpad * opad)
    bytes_accessed = (bpad * n_in * in_bytes                  # x stream
                      + bpad * n_out * 4                      # narrow output stream
                      + (n_in * hpad + hpad * opad) * in_bytes
                      + (hpad + opad) * 4)                    # weights + biases

    out = pl.pallas_call(
        qswitch_kernel,
        out_shape=jax.ShapeDtypeStruct((bpad, n_out), jnp.float32),
        grid=(steps,),
        in_specs=[
            pl.BlockSpec((tm, n_in), lambda i: (i, 0)),     # streamed batch tile
            pl.BlockSpec((n_in, hpad), lambda i: (0, 0)),   # resident weights (VMEM)
            pl.BlockSpec((1, hpad), lambda i: (0, 0)),      # resident bias
            pl.BlockSpec((hpad, opad), lambda i: (0, 0)),   # resident weights
            pl.BlockSpec((1, opad), lambda i: (0, 0)),      # resident bias
        ],
        out_specs=pl.BlockSpec((tm, n_out), lambda i: (i, 0)),  # narrow, no padded lanes
        compiler_params=pltpu.CompilerParams(
            dimension_semantics=("parallel",),              # megacore split on v7x
        ),
        cost_estimate=pl.CostEstimate(
            flops=flops, transcendentals=0, bytes_accessed=bytes_accessed),
    )(xp, w1p, b1p, w2p, b2p)

    return out[:B, :] if bpad != B else out


def init_qswitch_params(key, n_inputs, n_outputs, n_hidden=N_HIDDEN):
    """Deterministic re-implementation of QSwitch.__init__ parameter init:
       weights ~ N(0, sqrt(2/fan_in)), biases ~ U(-1/sqrt(fan_in), 1/sqrt(fan_in))
       (PyTorch nn.Linear default bias init). Weights stored transposed."""
    k1, k2, k3, k4 = jax.random.split(key, 4)
    w1 = jax.random.normal(k1, (n_inputs, n_hidden), jnp.float32) * math.sqrt(2.0 / n_inputs)
    b1 = jax.random.uniform(k2, (1, n_hidden), jnp.float32,
                            minval=-1.0 / math.sqrt(n_inputs),
                            maxval=1.0 / math.sqrt(n_inputs))
    w2 = jax.random.normal(k3, (n_hidden, n_outputs), jnp.float32) * math.sqrt(2.0 / n_hidden)
    b2 = jax.random.uniform(k4, (1, n_outputs), jnp.float32,
                            minval=-1.0 / math.sqrt(n_hidden),
                            maxval=1.0 / math.sqrt(n_hidden))
    return w1, b1, w2, b2


def _reference(x, w1, b1, w2, b2):
    return jnp.maximum(jnp.maximum(x @ w1 + b1, 0.0) @ w2 + b2, 0.0)


if __name__ == "__main__":
    key = jax.random.PRNGKey(0)
    kx, kp, kx2 = jax.random.split(key, 3)

    batch = 8
    n_inputs = 32
    n_outputs = 16

    w1, b1, w2, b2 = init_qswitch_params(kp, n_inputs, n_outputs)

    # Small-batch path (single grid step, no batch padding).
    x = jax.random.normal(kx, (batch, n_inputs), jnp.float32)
    out = jax.block_until_ready(qswitch_forward(x, w1, b1, w2, b2))
    ref = _reference(x, w1, b1, w2, b2)
    assert out.shape == (batch, n_outputs)
    assert jnp.allclose(out, ref, atol=1e-5, rtol=1e-5)

    # Tiled path: B=600 -> 2 grid steps of 304 rows (8 padded rows total),
    # resident weights across steps, narrow output store.
    x2 = jax.random.normal(kx2, (600, n_inputs), jnp.float32)
    out2 = jax.block_until_ready(qswitch_forward(x2, w1, b1, w2, b2))
    ref2 = _reference(x2, w1, b1, w2, b2)
    assert out2.shape == (600, n_outputs)
    assert jnp.allclose(out2, ref2, atol=1e-5, rtol=1e-5)

    # Optional bf16 MXU-input path (v6e/v7x); looser tolerance, f32 accumulate.
    out3 = jax.block_until_ready(qswitch_forward(x2, w1, b1, w2, b2, use_bf16=True))
    assert out3.shape == (600, n_outputs)
    assert jnp.allclose(out3, ref2, atol=1e-1, rtol=1e-1)

    # `last_prediction` attribute of the nn.Module is just the returned value;
    # callers can keep it in host-side state.  # TODO(synk): stateful attribute not kernel-relevant.
    print("KERNEL_OK")
</pallas_src>

<mosaic_0001>
module attributes {stable_mosaic.version = 11 : i64} {
  func.func @qswitch_kernel(%arg0: i32, %arg1: memref<8x32xf32, #tpu.memory_space<vmem>>, %arg2: memref<32x128xf32, #tpu.memory_space<vmem>>, %arg3: memref<1x128xf32, #tpu.memory_space<vmem>>, %arg4: memref<128x128xf32, #tpu.memory_space<vmem>>, %arg5: memref<1x128xf32, #tpu.memory_space<vmem>>, %arg6: memref<8x16xf32, #tpu.memory_space<vmem>>) attributes {dimension_semantics = [#tpu.dimension_semantics<parallel>], iteration_bounds = array<i64: 1>, scalar_prefetch = 0 : i64, scratch_operands = 0 : i64, tpu.core_type = #tpu.core_type<tc>, window_params = [{transform_indices = @transform_0, window_bounds = array<i64: 8, 32>}, {pipeline_mode = #tpu.pipeline_mode<synchronous>, transform_indices = @transform_1, window_bounds = array<i64: 32, 128>}, {pipeline_mode = #tpu.pipeline_mode<synchronous>, transform_indices = @transform_2, window_bounds = array<i64: 1, 128>}, {pipeline_mode = #tpu.pipeline_mode<synchronous>, transform_indices = @transform_3, window_bounds = array<i64: 128, 128>}, {pipeline_mode = #tpu.pipeline_mode<synchronous>, transform_indices = @transform_4, window_bounds = array<i64: 1, 128>}, {transform_indices = @transform_5, window_bounds = array<i64: 8, 16>}]} {
    %c0 = arith.constant 0 : index
    %c0_0 = arith.constant 0 : index
    %0 = vector.load %arg1[%c0, %c0_0] : memref<8x32xf32, #tpu.memory_space<vmem>>, vector<8x32xf32>
    %c0_1 = arith.constant 0 : index
    %c0_2 = arith.constant 0 : index
    %1 = vector.load %arg2[%c0_1, %c0_2] : memref<32x128xf32, #tpu.memory_space<vmem>>, vector<32x128xf32>
    %cst = arith.constant dense<0.000000e+00> : vector<8x128xf32>
    %2 = tpu.matmul %0, %1, %cst {dimension_numbers = #tpu.dot_dimension_numbers<[1], [0], [0], [1], [0, 0, 1, 1], [], []>} : vector<8x32xf32>, vector<32x128xf32>, vector<8x128xf32> -> vector<8x128xf32>
    %c0_3 = arith.constant 0 : index
    %c0_4 = arith.constant 0 : index
    %3 = vector.load %arg3[%c0_3, %c0_4] : memref<1x128xf32, #tpu.memory_space<vmem>>, vector<1x128xf32>
    %4 = vector.broadcast %3 : vector<1x128xf32> to vector<8x128xf32>
    %5 = arith.addf %2, %4 : vector<8x128xf32>
    %cst_5 = arith.constant 0.000000e+00 : f32
    %6 = vector.broadcast %cst_5 : f32 to vector<8x128xf32>
    %7 = arith.maximumf %5, %6 : vector<8x128xf32>
    %c0_6 = arith.constant 0 : index
    %c0_7 = arith.constant 0 : index
    %8 = vector.load %arg4[%c0_6, %c0_7] : memref<128x128xf32, #tpu.memory_space<vmem>>, vector<128x128xf32>
    %cst_8 = arith.constant dense<0.000000e+00> : vector<8x128xf32>
    %9 = tpu.matmul %7, %8, %cst_8 {dimension_numbers = #tpu.dot_dimension_numbers<[1], [0], [0], [1], [0, 0, 1, 1], [], []>} : vector<8x128xf32>, vector<128x128xf32>, vector<8x128xf32> -> vector<8x128xf32>
    %c0_9 = arith.constant 0 : index
    %c0_10 = arith.constant 0 : index
    %10 = vector.load %arg5[%c0_9, %c0_10] : memref<1x128xf32, #tpu.memory_space<vmem>>, vector<1x128xf32>
    %11 = vector.broadcast %10 : vector<1x128xf32> to vector<8x128xf32>
    %12 = arith.addf %9, %11 : vector<8x128xf32>
    %cst_11 = arith.constant 0.000000e+00 : f32
    %13 = vector.broadcast %cst_11 : f32 to vector<8x128xf32>
    %14 = arith.maximumf %12, %13 : vector<8x128xf32>
    %15 = vector.extract_strided_slice %14 {offsets = [0, 0], sizes = [8, 16], strides = [1, 1]} : vector<8x128xf32> to vector<8x16xf32>
    %c0_12 = arith.constant 0 : index
    %c0_13 = arith.constant 0 : index
    %16 = vector.load %arg6[%c0_12, %c0_13] : memref<8x16xf32, #tpu.memory_space<vmem>>, vector<8x16xf32>
    tpu.vector_store %arg6[%c0_12, %c0_13], %15 {strides = array<i32>} : memref<8x16xf32, #tpu.memory_space<vmem>>, vector<8x16xf32>,
    return
  }
  func.func @transform_0(%arg0: i32) -> (i32, i32) {
    %c0_i32 = arith.constant 0 : i32
    %c0_i32_0 = arith.constant 0 : i32
    return %arg0, %c0_i32 : i32, i32
  }
  func.func @transform_1(%arg0: i32) -> (i32, i32) {
    %c0_i32 = arith.constant 0 : i32
    %c0_i32_0 = arith.constant 0 : i32
    %c0_i32_1 = arith.constant 0 : i32
    return %c0_i32, %c0_i32_0 : i32, i32
  }
  func.func @transform_2(%arg0: i32) -> (i32, i32) {
    %c0_i32 = arith.constant 0 : i32
    %c0_i32_0 = arith.constant 0 : i32
    %c0_i32_1 = arith.constant 0 : i32
    return %c0_i32, %c0_i32_0 : i32, i32
  }
  func.func @transform_3(%arg0: i32) -> (i32, i32) {
    %c0_i32 = arith.constant 0 : i32
    %c0_i32_0 = arith.constant 0 : i32
    %c0_i32_1 = arith.constant 0 : i32
    return %c0_i32, %c0_i32_0 : i32, i32
  }
  func.func @transform_4(%arg0: i32) -> (i32, i32) {
    %c0_i32 = arith.constant 0 : i32
    %c0_i32_0 = arith.constant 0 : i32
    %c0_i32_1 = arith.constant 0 : i32
    return %c0_i32, %c0_i32_0 : i32, i32
  }
  func.func @transform_5(%arg0: i32) -> (i32, i32) {
    %c0_i32 = arith.constant 0 : i32
    %c0_i32_0 = arith.constant 0 : i32
    return %arg0, %c0_i32 : i32, i32
  }
}

</mosaic_0001>

<bundles_post_ra>
// kernel: qswitch_forward.1
= control target key start
LH: loop header
LB: loop body
LE: loop exit
PB: predicated region body
PF: predicated region fallthrough
CT: control target
= control target key end

     0   :  { %vm30_vm0 = vcmask 261120   ;;  %s247_s0 = inlined_call_operand.vmem [shape: f32[8,32], index: 0, kind: input, shape index: {}]   ;;  %s248_s1 = inlined_call_operand.vmem [shape: f32[32,128], index: 1, kind: input, shape index: {}]   ;;  %s249_s2 = inlined_call_operand.vmem [shape: f32[1,128], index: 2, kind: input, shape index: {}]   ;;  %s250_s3 = inlined_call_operand.vmem [shape: f32[128,128], index: 3, kind: input, shape index: {}]   ;;  %s251_s4 = inlined_call_operand.vmem [shape: f32[1,128], index: 4, kind: input, shape index: {}]   ;;  %s252_s5 = inlined_call_operand.hbm [shape: f32[8,16], index: 5, kind: output, shape index: {}]  }
   0x1   :  { %v25_v0 = vld [vmem:[%s248_s1 + $0x18] sm:$0xff]  ;;  %v24_v1 = vld [vmem:[%s248_s1 + $0x10] sm:$0xff]  ;;  %v23_v3 = vld [vmem:[%s248_s1 + $0x8] sm:$0xff] }
   0x2   :  { %46 = vmatpush.msra.mxu0 %v25_v0  ;;  %v70_v2 = vld [vmem:[%s250_s3 + $0x78] sm:$0xff]  ;;  %v69_v4 = vld [vmem:[%s250_s3 + $0x70] sm:$0xff]  ;;  %v68_v5 = vld [vmem:[%s250_s3 + $0x68] sm:$0xff] }
   0x3   :  { %75 = vmatpush.msra.mxu1 %v70_v2  ;;  %v22_v6 = vld [vmem:[%s248_s1] sm:$0xff]  ;;  %v66_v9 = vld [vmem:[%s250_s3 + $0x58] sm:$0xff] }
   0x4   :  { %47 = vmatpush.msra.mxu0 %v24_v1  ;;  %v21_v7 = vld [vmem:[%s247_s0] sm:$0xff] }
   0x5   :  { %76 = vmatpush.msra.mxu1 %v69_v4  ;;  %v67_v8 = vld [vmem:[%s250_s3 + $0x60] sm:$0xff] }
   0x6   :  { %48 = vmatpush.msra.mxu0 %v23_v3 }
   0x7   :  { %77 = vmatpush.msra.mxu1 %v68_v5 }
   0x8   :  { %49 = vmatpush.msra.mxu0 %v22_v6 }
   0x9   :  { %10 = vsyncpa [#allocation3], 0  ;;  %114 = vmatmul.msk.f32.vlgmr.msra.gmra.mxu0 %vm30_vm0, %v21_v7  ;;  %78 = vmatpush.msra.mxu1 %v67_v8  ;;  %v65_v10 = vld [vmem:[%s250_s3 + $0x50] sm:$0xff]  ;;  %v64_v11 = vld [vmem:[%s250_s3 + $0x48] sm:$0xff]  ;;  %s144_s12 = smov [#allocation2]   ;;  %vm96_vm1 = vcmask 130048  }
   0xa   :  { %v63_v12 = vld [vmem:[%s250_s3 + $0x40] sm:$0xff]  ;;  %v62_v13 = vld [vmem:[%s250_s3 + $0x38] sm:$0xff]  ;;  %v61_v14 = vld [vmem:[%s250_s3 + $0x30] sm:$0xff]  ;;  %s103_s1 = sshll.u32 %s144_s12, 4  ;;  %s104_s1 = int_to_ptr.vmem [resolvable:$true] %s103_s1 }
   0xb   :  { %79 = vmatpush.msra.mxu1 %v66_v9  ;;  %v60_v15 = vld [vmem:[%s250_s3 + $0x28] sm:$0xff]  ;;  %v59_v16 = vld [vmem:[%s250_s3 + $0x20] sm:$0xff]  ;;  %v58_v17 = vld [vmem:[%s250_s3 + $0x18] sm:$0xff] }
   0xc   :  { %v57_v18 = vld [vmem:[%s250_s3 + $0x10] sm:$0xff]  ;;  %v56_v19 = vld [vmem:[%s250_s3 + $0x8] sm:$0xff]  ;;  %v55_v20 = vld [vmem:[%s250_s3] sm:$0xff]  ;;  %s105_s3 = sshll.u32 %s252_s5, 4  ;;  %s106_s3 = int_to_ptr.hbm [resolvable:$true] %s105_s3 }
   0xd   :  { %80 = vmatpush.msra.mxu1 %v65_v10  ;;  %v116_v21 = vld [vmem:[%s249_s2] ss:$0 sm:$0xff] }
   0xe   :  { %v117_v25 = vld [vmem:[%s251_s4] ss:$0 sm:$0xff] }
   0xf   :  { %81 = vmatpush.msra.mxu1 %v64_v11 }
  0x11   :  { %82 = vmatpush.msra.mxu1 %v63_v12 }
  0x13   :  { %83 = vmatpush.msra.mxu1 %v62_v13 }
  0x15   :  { %84 = vmatpush.msra.mxu1 %v61_v14 }
  0x17   :  { %85 = vmatpush.msra.mxu1 %v60_v15 }
  0x19   :  { %86 = vmatpush.msra.mxu1 %v59_v16 }
  0x1b   :  { %87 = vmatpush.msra.mxu1 %v58_v17 }
  0x1d   :  { %88 = vmatpush.msra.mxu1 %v57_v18 }
  0x1f   :  { %89 = vmatpush.msra.mxu1 %v56_v19 }
  0x21   :  { %90 = vmatpush.msra.mxu1 %v55_v20 }
  0x86   :  { %v51_v22 = vpop.f32.mrf.mxu0 }
  0x87   :  { %v52_v23 = vadd.f32 %v116_v21, %v51_v22 }
  0x89   :  { %v54_v24 = vmax.f32 %v52_v23, 0.0 }
  0x8b   :  { %91 = vmatmul.f32.vlgmr.msra.gmra.mxu1 %v54_v24 }
 0x108   :  { %v92_v26 = vpop.f32.mrf.mxu1 }
 0x109   :  { %v93_v27 = vadd.f32 %v117_v25, %v92_v26 }
 0x10b   :  { %v95_v28 = vmax.f32 %v93_v27, 0.0 }
 0x10d   :  { %97 = vst.msk [vmem:[#allocation2] sm:$0xff] %vm96_vm1, %v95_v28 }
 0x10e   :  { %108 = dma.vmem_to_hbm [thread:$0]  %s104_s1, 128, %s106_s3, [#allocation3]  }
 0x10f   :  { %142 = dma.done.wait [#allocation3], 128  }
 0x110   :  { %143 = vsyncadd [#allocation3], 4294967168 }
 0x111   :  { %113 = vsyncpa [#allocation3], 1 }

</bundles_post_ra>
